<compile_context>
chip_gen: v7x
topology: tpu7x:2x2x1
jax: 0.10.0
libtpu: 0.0.40
codegen_flags: <defaults>
</compile_context>

<pallas_src>
import functools

import numpy as np

import jax
import jax.numpy as jnp
from jax import lax
from jax.experimental import pallas as pl
from jax.experimental.pallas import tpu as pltpu

_BN_EPS = 1e-5


# ------------------------------ activations --------------------------------

def _hardswish(x):
    return x * jnp.clip(x + 3.0, 0.0, 6.0) * (1.0 / 6.0)


def _hardsigmoid(x):
    return jnp.clip(x + 3.0, 0.0, 6.0) * (1.0 / 6.0)


def _apply_act(x, act):
    if act == "relu":
        return jnp.maximum(x, 0.0)
    if act == "hardswish":
        return _hardswish(x)
    if act == "hardsigmoid":
        return _hardsigmoid(x)
    return x  # identity


# ------------------------------ fused kernel --------------------------------

def _bottleneck_kernel(*refs, k, W, P, NB, act, use_se, residual, mm_dtype):
    """One grid step = NB images, fully fused in VMEM.

    Activation layout: (C, L) with L = NB*H*W on the 128-lane axis.
    BN scales are pre-folded into the weights; only bias adds remain here.
    """
    it = iter(refs)
    x_ref = next(it)
    msk_ref = next(it)
    eblk_ref = next(it) if (use_se and NB > 1) else None
    wexp_ref, bexp_ref = next(it), next(it)
    wdw_ref, bdw_ref = next(it), next(it)
    if use_se:
        w1_ref, b1_ref, w2_ref, b2_ref = next(it), next(it), next(it), next(it)
    wpw_ref, bpw_ref = next(it), next(it)
    o_ref = next(it)

    L = NB * P
    pad = (k - 1) // 2
    x = x_ref[...]                                           # (Cin, L)

    # ---- expansion 1x1 conv (MXU, lane axis = NB*H*W) + bias + activation ---
    y = jnp.dot(wexp_ref[...], x.astype(mm_dtype),
                preferred_element_type=jnp.float32)          # (exp, L)
    y = _apply_act(y + bexp_ref[...], act)

    # ---- depthwise kxk conv: XLU lane rolls + precomputed border masks ------
    center = pad * k + pad
    acc = y * wdw_ref[center]                 # center tap: all-valid, no roll
    for kh in range(k):                       # static unroll over taps
        for kw in range(k):
            idx = kh * k + kw
            if idx == center:
                continue
            d = (kh - pad) * W + (kw - pad)   # flat pixel offset
            shifted = pltpu.roll(y, (-d) % L, axis=1)
            acc = acc + shifted * msk_ref[idx] * wdw_ref[idx]
    z = _apply_act(acc + bdw_ref[...], act)                  # (exp, L)

    # ---- squeeze-excite: per-image pool + gate, all in-register -------------
    if use_se:
        if NB > 1:
            # block-diagonal-ones matmul pools / broadcasts per packed image
            eblk = eblk_ref[...]                             # (NB, L)
            pooled = lax.dot_general(
                z, eblk, (((1,), (1,)), ((), ())),
                preferred_element_type=jnp.float32) * (1.0 / P)   # (exp, NB)
        else:
            pooled = jnp.mean(z, axis=1, keepdims=True)      # (exp, 1)
        h = jnp.dot(w1_ref[...], pooled.astype(mm_dtype),
                    preferred_element_type=jnp.float32)      # (red, NB)
        h = jnp.maximum(h + b1_ref[...], 0.0)
        g = jnp.dot(w2_ref[...], h.astype(mm_dtype),
                    preferred_element_type=jnp.float32)      # (exp, NB)
        g = _hardsigmoid(g + b2_ref[...])
        if NB > 1:
            g = jnp.dot(g, eblk, preferred_element_type=jnp.float32)  # (exp, L)
        z = z * g

    # ---- projection 1x1 conv + bias (+ residual) ----------------------------
    out = jnp.dot(wpw_ref[...], z.astype(mm_dtype),
                  preferred_element_type=jnp.float32)        # (out, L)
    out = out + bpw_ref[...]
    if residual:
        out = out + x.astype(jnp.float32)
    o_ref[...] = out.astype(o_ref.dtype)


def _dw_border_masks(k, H, W, nb):
    """Per-tap validity masks (zero-pad borders), tiled over nb packed images."""
    pad = (k - 1) // 2
    P = H * W
    h = np.arange(P, dtype=np.int64) // W
    w = np.arange(P, dtype=np.int64) % W
    masks = np.zeros((k * k, 1, P), np.float32)
    for kh in range(k):
        for kw in range(k):
            dh, dw_ = kh - pad, kw - pad
            valid = ((h + dh >= 0) & (h + dh < H) &
                     (w + dw_ >= 0) & (w + dw_ < W))
            masks[kh * k + kw, 0, :] = valid.astype(np.float32)
    return jnp.asarray(np.tile(masks, (1, 1, nb)))


# ------------------------------ forward wrapper ------------------------------

def bottleneck_forward(x_nchw, p, *, kernel_size, stride, use_se, nl,
                       mm_dtype=jnp.bfloat16, images_per_step=None):
    assert kernel_size % 2 == 1, "even depthwise kernels need asymmetric padding"
    N, in_c, _, _ = x_nchw.shape
    if stride != 1:
        # The module places the stride on the 1x1 expansion conv, which is
        # exactly input subsampling followed by a stride-1 1x1 conv.
        # TODO(synk): fold this slice into the kernel's input DMA.
        x_nchw = x_nchw[:, :, ::stride, ::stride]
    N, _, H, W = x_nchw.shape
    P = H * W
    k = kernel_size
    exp_c = p["exp_w"].shape[1]
    out_c = p["pw_w"].shape[1]
    residual = (stride == 1) and (in_c == out_c)

    # --- batch packing: NB images per grid step, lane width L = NB*H*W -------
    if images_per_step is None:
        # keep >= 2 "parallel" grid steps when possible (v7x has 2 TensorCores)
        images_per_step = max(1, N // 2)
    NB = max(1, min(images_per_step, N))
    if (NB * P) % 128 != 0:
        NB = N                         # single full-extent block stays legal
    nchunks = -(-N // NB)
    Np = nchunks * NB
    if Np != N:
        x_nchw = jnp.pad(x_nchw, ((0, Np - N), (0, 0), (0, 0), (0, 0)))
    L = NB * P

    # CP layout: channels on sublanes, batch*H*W on the 128-lane axis.
    x_cp = jnp.transpose(x_nchw.reshape(Np, in_c, P), (1, 0, 2)).reshape(
        in_c, Np * P)
    masks = _dw_border_masks(k, H, W, NB)

    # --- weight prep: fold BN scales into weights, pre-cast MXU operands -----
    wexp = (jnp.transpose(p["exp_w"]) * p["exp_scale"][:, None]).astype(mm_dtype)
    bexp = p["exp_bias"].reshape(exp_c, 1)
    wdw = (p["dw_w"] * p["dw_scale"]).reshape(k * k, exp_c, 1)  # f32 VPU taps
    bdw = p["dw_bias"].reshape(exp_c, 1)
    wpw = (jnp.transpose(p["pw_w"]) * p["pw_scale"][:, None]).astype(mm_dtype)
    bpw = p["pw_bias"].reshape(out_c, 1)

    def const_spec(shape):
        return pl.BlockSpec(shape, lambda n, _r=len(shape): (0,) * _r)

    inputs = [x_cp, masks]
    in_specs = [pl.BlockSpec((in_c, L), lambda n: (0, n)),
                const_spec((k * k, 1, L))]
    if use_se and NB > 1:
        eblk = jnp.asarray(np.kron(np.eye(NB, dtype=np.float32),
                                   np.ones((1, P), np.float32)))   # (NB, L)
        inputs.append(eblk)
        in_specs.append(const_spec((NB, L)))
    inputs += [wexp, bexp, wdw, bdw]
    in_specs += [const_spec((exp_c, in_c)), const_spec((exp_c, 1)),
                 const_spec((k * k, exp_c, 1)), const_spec((exp_c, 1))]
    if use_se:
        red = p["se1_w"].shape[1]
        w1 = (jnp.transpose(p["se1_w"]) * p["se1_scale"][:, None]).astype(mm_dtype)
        w2 = (jnp.transpose(p["se2_w"]) * p["se2_scale"][:, None]).astype(mm_dtype)
        inputs += [w1, p["se1_bias"].reshape(red, 1),
                   w2, p["se2_bias"].reshape(exp_c, 1)]
        in_specs += [const_spec((red, exp_c)), const_spec((red, 1)),
                     const_spec((exp_c, red)), const_spec((exp_c, 1))]
    inputs += [wpw, bpw]
    in_specs += [const_spec((out_c, exp_c)), const_spec((out_c, 1))]

    kern = functools.partial(_bottleneck_kernel, k=k, W=W, P=P, NB=NB, act=nl,
                             use_se=use_se, residual=residual, mm_dtype=mm_dtype)
    out_cp = pl.pallas_call(
        kern,
        out_shape=jax.ShapeDtypeStruct((out_c, Np * P), x_nchw.dtype),
        grid=(nchunks,),
        in_specs=in_specs,
        out_specs=pl.BlockSpec((out_c, L), lambda n: (0, n)),
        compiler_params=pltpu.CompilerParams(
            dimension_semantics=("parallel",),   # batch chunks across TCs
            vmem_limit_bytes=32 * 1024 * 1024),
    )(*inputs)
    out = out_cp.reshape(out_c, Np, P).transpose(1, 0, 2)[:N]
    return out.reshape(N, out_c, H, W)


# ------------------------------ params --------------------------------------

def _fuse_bn(gamma, beta, mean, var):
    scale = gamma / jnp.sqrt(var + _BN_EPS)
    return scale, beta - mean * scale


def init_bottleneck_params(key, in_c, kernel_size, exp_size, out_c, se):
    keys = jax.random.split(key, 10)

    def bn(kk, c):
        k1, k2, k3 = jax.random.split(kk, 3)
        gamma = 1.0 + 0.1 * jax.random.normal(k1, (c,), jnp.float32)
        beta = 0.1 * jax.random.normal(k2, (c,), jnp.float32)
        mean = 0.1 * jax.random.normal(k3, (c,), jnp.float32)
        var = jnp.full((c,), 0.9, jnp.float32)
        return _fuse_bn(gamma, beta, mean, var)

    p = {}
    p["exp_w"] = 0.1 * jax.random.normal(keys[0], (in_c, exp_size), jnp.float32)
    p["exp_scale"], p["exp_bias"] = bn(keys[1], exp_size)
    p["dw_w"] = 0.1 * jax.random.normal(
        keys[2], (kernel_size, kernel_size, exp_size), jnp.float32)
    p["dw_scale"], p["dw_bias"] = bn(keys[3], exp_size)
    p["pw_w"] = 0.1 * jax.random.normal(keys[4], (exp_size, out_c), jnp.float32)
    p["pw_scale"], p["pw_bias"] = bn(keys[5], out_c)
    if se:
        red = exp_size // 4
        p["se1_w"] = 0.1 * jax.random.normal(keys[6], (exp_size, red), jnp.float32)
        p["se1_scale"], p["se1_bias"] = bn(keys[7], red)
        p["se2_w"] = 0.1 * jax.random.normal(keys[8], (red, exp_size), jnp.float32)
        p["se2_scale"], p["se2_bias"] = bn(keys[9], exp_size)
    return p


# ------------------------------ pure-JAX reference ---------------------------

def bottleneck_reference(x_nchw, p, *, kernel_size, stride, use_se, nl):
    in_c = x_nchw.shape[1]
    out_c = p["pw_w"].shape[1]
    x = jnp.transpose(x_nchw, (0, 2, 3, 1))
    identity = x
    xs = x[:, ::stride, ::stride, :]
    y = _apply_act(xs @ p["exp_w"] * p["exp_scale"] + p["exp_bias"], nl)
    C = y.shape[-1]
    yd = jax.lax.conv_general_dilated(
        y, p["dw_w"].reshape(kernel_size, kernel_size, 1, C),
        window_strides=(1, 1), padding="SAME",
        dimension_numbers=("NHWC", "HWIO", "NHWC"), feature_group_count=C)
    yd = _apply_act(yd * p["dw_scale"] + p["dw_bias"], nl)
    if use_se:
        pooled = jnp.mean(yd, axis=(1, 2), keepdims=True)
        h = jnp.maximum(pooled @ p["se1_w"] * p["se1_scale"] + p["se1_bias"], 0.0)
        g = _hardsigmoid(h @ p["se2_w"] * p["se2_scale"] + p["se2_bias"])
        yd = yd * g
    out = yd @ p["pw_w"] * p["pw_scale"] + p["pw_bias"]
    if stride == 1 and in_c == out_c:
        out = out + identity
    return jnp.transpose(out, (0, 3, 1, 2))


# ------------------------------ main -----------------------------------------

if __name__ == "__main__":
    key = jax.random.PRNGKey(0)
    kx1, kp1, kx2, kp2 = jax.random.split(key, 4)

    # Config A: Bottleneck(in=8, k=3, exp=16, out=8, se=True, nl=Hardswish, s=1)
    # -> residual branch active.
    N, in_c, H, W = 2, 8, 16, 16
    ks, exp_c, out_c, se, nl, s = 3, 16, 8, True, "hardswish", 1
    x = jax.random.normal(kx1, (N, in_c, H, W), jnp.float32)
    pA = init_bottleneck_params(kp1, in_c, ks, exp_c, out_c, se)
    refA = bottleneck_reference(x, pA, kernel_size=ks, stride=s, use_se=se, nl=nl)

    # f32 MXU path, default packing (1 image/step -> 2 "parallel" grid steps).
    outA = jax.block_until_ready(bottleneck_forward(
        x, pA, kernel_size=ks, stride=s, use_se=se, nl=nl, mm_dtype=jnp.float32))
    assert outA.shape == (N, out_c, H, W), outA.shape
    errA = float(jnp.max(jnp.abs(outA - refA)))
    assert errA < 5e-4, errA

    # f32 MXU path, both images packed into one lane-dense 512-lane slab.
    outA2 = jax.block_until_ready(bottleneck_forward(
        x, pA, kernel_size=ks, stride=s, use_se=se, nl=nl,
        mm_dtype=jnp.float32, images_per_step=2))
    errA2 = float(jnp.max(jnp.abs(outA2 - refA)))
    assert errA2 < 5e-4, errA2

    # Default bf16 MXU fast path (BN-folded, pre-cast weights; f32 accumulate).
    outA16 = jax.block_until_ready(bottleneck_forward(
        x, pA, kernel_size=ks, stride=s, use_se=se, nl=nl, images_per_step=2))
    errA16 = float(jnp.max(jnp.abs(outA16 - refA)))
    assert errA16 < 1e-1, errA16

    # Config B: stride-2, k=5, no SE, ReLU, out != in (no residual).
    N2, in2, H2, W2 = 2, 8, 32, 32
    ks2, exp2, out2, se2, nl2, s2 = 5, 24, 16, False, "relu", 2
    x2 = jax.random.normal(kx2, (N2, in2, H2, W2), jnp.float32)
    pB = init_bottleneck_params(kp2, in2, ks2, exp2, out2, se2)

    outB = jax.block_until_ready(bottleneck_forward(
        x2, pB, kernel_size=ks2, stride=s2, use_se=se2, nl=nl2,
        mm_dtype=jnp.float32))
    refB = bottleneck_reference(x2, pB, kernel_size=ks2, stride=s2,
                                use_se=se2, nl=nl2)
    assert outB.shape == (N2, out2, H2 // s2, W2 // s2), outB.shape
    errB = float(jnp.max(jnp.abs(outB - refB)))
    assert errB < 5e-4, errB

    print("KERNEL_OK")
</pallas_src>

<mosaic_0001>
module attributes {stable_mosaic.version = 11 : i64} {
  func.func @_bottleneck_kernel(%arg0: i32, %arg1: memref<8x256xf32, #tpu.memory_space<vmem>>, %arg2: memref<9x1x256xf32, #tpu.memory_space<vmem>>, %arg3: memref<16x8xf32, #tpu.memory_space<vmem>>, %arg4: memref<16x1xf32, #tpu.memory_space<vmem>>, %arg5: memref<9x16x1xf32, #tpu.memory_space<vmem>>, %arg6: memref<16x1xf32, #tpu.memory_space<vmem>>, %arg7: memref<4x16xf32, #tpu.memory_space<vmem>>, %arg8: memref<4x1xf32, #tpu.memory_space<vmem>>, %arg9: memref<16x4xf32, #tpu.memory_space<vmem>>, %arg10: memref<16x1xf32, #tpu.memory_space<vmem>>, %arg11: memref<8x16xf32, #tpu.memory_space<vmem>>, %arg12: memref<8x1xf32, #tpu.memory_space<vmem>>, %arg13: memref<8x256xf32, #tpu.memory_space<vmem>>) attributes {dimension_semantics = [#tpu.dimension_semantics<parallel>], iteration_bounds = array<i64: 2>, scalar_prefetch = 0 : i64, scratch_operands = 0 : i64, tpu.core_type = #tpu.core_type<tc>, window_params = [{transform_indices = @transform_0, window_bounds = array<i64: 8, 256>}, {pipeline_mode = #tpu.pipeline_mode<synchronous>, transform_indices = @transform_1, window_bounds = array<i64: 9, 1, 256>}, {pipeline_mode = #tpu.pipeline_mode<synchronous>, transform_indices = @transform_2, window_bounds = array<i64: 16, 8>}, {pipeline_mode = #tpu.pipeline_mode<synchronous>, transform_indices = @transform_3, window_bounds = array<i64: 16, 1>}, {pipeline_mode = #tpu.pipeline_mode<synchronous>, transform_indices = @transform_4, window_bounds = array<i64: 9, 16, 1>}, {pipeline_mode = #tpu.pipeline_mode<synchronous>, transform_indices = @transform_5, window_bounds = array<i64: 16, 1>}, {pipeline_mode = #tpu.pipeline_mode<synchronous>, transform_indices = @transform_6, window_bounds = array<i64: 4, 16>}, {pipeline_mode = #tpu.pipeline_mode<synchronous>, transform_indices = @transform_7, window_bounds = array<i64: 4, 1>}, {pipeline_mode = #tpu.pipeline_mode<synchronous>, transform_indices = @transform_8, window_bounds = array<i64: 16, 4>}, {pipeline_mode = #tpu.pipeline_mode<synchronous>, transform_indices = @transform_9, window_bounds = array<i64: 16, 1>}, {pipeline_mode = #tpu.pipeline_mode<synchronous>, transform_indices = @transform_10, window_bounds = array<i64: 8, 16>}, {pipeline_mode = #tpu.pipeline_mode<synchronous>, transform_indices = @transform_11, window_bounds = array<i64: 8, 1>}, {transform_indices = @transform_12, window_bounds = array<i64: 8, 256>}]} {
    %c0 = arith.constant 0 : index
    %c0_0 = arith.constant 0 : index
    %0 = vector.load %arg1[%c0, %c0_0] : memref<8x256xf32, #tpu.memory_space<vmem>>, vector<8x256xf32>
    %c0_1 = arith.constant 0 : index
    %c0_2 = arith.constant 0 : index
    %1 = vector.load %arg3[%c0_1, %c0_2] : memref<16x8xf32, #tpu.memory_space<vmem>>, vector<16x8xf32>
    %cst = arith.constant dense<0.000000e+00> : vector<16x256xf32>
    %2 = tpu.matmul %1, %0, %cst {dimension_numbers = #tpu.dot_dimension_numbers<[1], [0], [0], [1], [0, 0, 1, 1], [], []>} : vector<16x8xf32>, vector<8x256xf32>, vector<16x256xf32> -> vector<16x256xf32>
    %c0_3 = arith.constant 0 : index
    %c0_4 = arith.constant 0 : index
    %3 = vector.load %arg4[%c0_3, %c0_4] : memref<16x1xf32, #tpu.memory_space<vmem>>, vector<16x1xf32>
    %4 = vector.broadcast %3 : vector<16x1xf32> to vector<16x256xf32>
    %5 = arith.addf %2, %4 : vector<16x256xf32>
    %cst_5 = arith.constant 3.000000e+00 : f32
    %6 = vector.broadcast %cst_5 : f32 to vector<16x256xf32>
    %7 = arith.addf %5, %6 : vector<16x256xf32>
    %cst_6 = arith.constant 0.000000e+00 : f32
    %cst_7 = arith.constant 6.000000e+00 : f32
    %8 = vector.broadcast %cst_6 : f32 to vector<16x256xf32>
    %9 = arith.maximumf %8, %7 : vector<16x256xf32>
    %10 = vector.broadcast %cst_7 : f32 to vector<16x256xf32>
    %11 = arith.minimumf %10, %9 : vector<16x256xf32>
    %12 = arith.mulf %5, %11 : vector<16x256xf32>
    %cst_8 = arith.constant 0.166666672 : f32
    %13 = vector.broadcast %cst_8 : f32 to vector<16x256xf32>
    %14 = arith.mulf %12, %13 : vector<16x256xf32>
    %c4 = arith.constant 4 : index
    %c0_9 = arith.constant 0 : index
    %c0_10 = arith.constant 0 : index
    %15 = vector.load %arg5[%c4, %c0_9, %c0_10] : memref<9x16x1xf32, #tpu.memory_space<vmem>>, vector<1x16x1xf32>
    %16 = vector.shape_cast %15 : vector<1x16x1xf32> to vector<16x1xf32>
    %17 = vector.broadcast %16 : vector<16x1xf32> to vector<16x256xf32>
    %18 = arith.mulf %14, %17 : vector<16x256xf32>
    %c17_i32 = arith.constant 17 : i32
    %19 = tpu.dynamic_rotate %14 by %c17_i32 dim 1 : vector<16x256xf32>, i32 -> vector<16x256xf32>
    %c0_11 = arith.constant 0 : index
    %c0_12 = arith.constant 0 : index
    %c0_13 = arith.constant 0 : index
    %20 = vector.load %arg2[%c0_11, %c0_12, %c0_13] : memref<9x1x256xf32, #tpu.memory_space<vmem>>, vector<1x1x256xf32>
    %21 = vector.shape_cast %20 : vector<1x1x256xf32> to vector<1x256xf32>
    %22 = vector.broadcast %21 : vector<1x256xf32> to vector<16x256xf32>
    %23 = arith.mulf %19, %22 : vector<16x256xf32>
    %c0_14 = arith.constant 0 : index
    %c0_15 = arith.constant 0 : index
    %c0_16 = arith.constant 0 : index
    %24 = vector.load %arg5[%c0_14, %c0_15, %c0_16] : memref<9x16x1xf32, #tpu.memory_space<vmem>>, vector<1x16x1xf32>
    %25 = vector.shape_cast %24 : vector<1x16x1xf32> to vector<16x1xf32>
    %26 = vector.broadcast %25 : vector<16x1xf32> to vector<16x256xf32>
    %27 = arith.mulf %23, %26 : vector<16x256xf32>
    %28 = arith.addf %18, %27 : vector<16x256xf32>
    %c16_i32 = arith.constant 16 : i32
    %29 = tpu.dynamic_rotate %14 by %c16_i32 dim 1 : vector<16x256xf32>, i32 -> vector<16x256xf32>
    %c1 = arith.constant 1 : index
    %c0_17 = arith.constant 0 : index
    %c0_18 = arith.constant 0 : index
    %30 = vector.load %arg2[%c1, %c0_17, %c0_18] : memref<9x1x256xf32, #tpu.memory_space<vmem>>, vector<1x1x256xf32>
    %31 = vector.shape_cast %30 : vector<1x1x256xf32> to vector<1x256xf32>
    %32 = vector.broadcast %31 : vector<1x256xf32> to vector<16x256xf32>
    %33 = arith.mulf %29, %32 : vector<16x256xf32>
    %c1_19 = arith.constant 1 : index
    %c0_20 = arith.constant 0 : index
    %c0_21 = arith.constant 0 : index
    %34 = vector.load %arg5[%c1_19, %c0_20, %c0_21] : memref<9x16x1xf32, #tpu.memory_space<vmem>>, vector<1x16x1xf32>
    %35 = vector.shape_cast %34 : vector<1x16x1xf32> to vector<16x1xf32>
    %36 = vector.broadcast %35 : vector<16x1xf32> to vector<16x256xf32>
    %37 = arith.mulf %33, %36 : vector<16x256xf32>
    %38 = arith.addf %28, %37 : vector<16x256xf32>
    %c15_i32 = arith.constant 15 : i32
    %39 = tpu.dynamic_rotate %14 by %c15_i32 dim 1 : vector<16x256xf32>, i32 -> vector<16x256xf32>
    %c2 = arith.constant 2 : index
    %c0_22 = arith.constant 0 : index
    %c0_23 = arith.constant 0 : index
    %40 = vector.load %arg2[%c2, %c0_22, %c0_23] : memref<9x1x256xf32, #tpu.memory_space<vmem>>, vector<1x1x256xf32>
    %41 = vector.shape_cast %40 : vector<1x1x256xf32> to vector<1x256xf32>
    %42 = vector.broadcast %41 : vector<1x256xf32> to vector<16x256xf32>
    %43 = arith.mulf %39, %42 : vector<16x256xf32>
    %c2_24 = arith.constant 2 : index
    %c0_25 = arith.constant 0 : index
    %c0_26 = arith.constant 0 : index
    %44 = vector.load %arg5[%c2_24, %c0_25, %c0_26] : memref<9x16x1xf32, #tpu.memory_space<vmem>>, vector<1x16x1xf32>
    %45 = vector.shape_cast %44 : vector<1x16x1xf32> to vector<16x1xf32>
    %46 = vector.broadcast %45 : vector<16x1xf32> to vector<16x256xf32>
    %47 = arith.mulf %43, %46 : vector<16x256xf32>
    %48 = arith.addf %38, %47 : vector<16x256xf32>
    %c1_i32 = arith.constant 1 : i32
    %49 = tpu.dynamic_rotate %14 by %c1_i32 dim 1 : vector<16x256xf32>, i32 -> vector<16x256xf32>
    %c3 = arith.constant 3 : index
    %c0_27 = arith.constant 0 : index
    %c0_28 = arith.constant 0 : index
    %50 = vector.load %arg2[%c3, %c0_27, %c0_28] : memref<9x1x256xf32, #tpu.memory_space<vmem>>, vector<1x1x256xf32>
    %51 = vector.shape_cast %50 : vector<1x1x256xf32> to vector<1x256xf32>
    %52 = vector.broadcast %51 : vector<1x256xf32> to vector<16x256xf32>
    %53 = arith.mulf %49, %52 : vector<16x256xf32>
    %c3_29 = arith.constant 3 : index
    %c0_30 = arith.constant 0 : index
    %c0_31 = arith.constant 0 : index
    %54 = vector.load %arg5[%c3_29, %c0_30, %c0_31] : memref<9x16x1xf32, #tpu.memory_space<vmem>>, vector<1x16x1xf32>
    %55 = vector.shape_cast %54 : vector<1x16x1xf32> to vector<16x1xf32>
    %56 = vector.broadcast %55 : vector<16x1xf32> to vector<16x256xf32>
    %57 = arith.mulf %53, %56 : vector<16x256xf32>
    %58 = arith.addf %48, %57 : vector<16x256xf32>
    %c255_i32 = arith.constant 255 : i32
    %59 = tpu.dynamic_rotate %14 by %c255_i32 dim 1 : vector<16x256xf32>, i32 -> vector<16x256xf32>
    %c5 = arith.constant 5 : index
    %c0_32 = arith.constant 0 : index
    %c0_33 = arith.constant 0 : index
    %60 = vector.load %arg2[%c5, %c0_32, %c0_33] : memref<9x1x256xf32, #tpu.memory_space<vmem>>, vector<1x1x256xf32>
    %61 = vector.shape_cast %60 : vector<1x1x256xf32> to vector<1x256xf32>
    %62 = vector.broadcast %61 : vector<1x256xf32> to vector<16x256xf32>
    %63 = arith.mulf %59, %62 : vector<16x256xf32>
    %c5_34 = arith.constant 5 : index
    %c0_35 = arith.constant 0 : index
    %c0_36 = arith.constant 0 : index
    %64 = vector.load %arg5[%c5_34, %c0_35, %c0_36] : memref<9x16x1xf32, #tpu.memory_space<vmem>>, vector<1x16x1xf32>
    %65 = vector.shape_cast %64 : vector<1x16x1xf32> to vector<16x1xf32>
    %66 = vector.broadcast %65 : vector<16x1xf32> to vector<16x256xf32>
    %67 = arith.mulf %63, %66 : vector<16x256xf32>
    %68 = arith.addf %58, %67 : vector<16x256xf32>
    %c241_i32 = arith.constant 241 : i32
    %69 = tpu.dynamic_rotate %14 by %c241_i32 dim 1 : vector<16x256xf32>, i32 -> vector<16x256xf32>
    %c6 = arith.constant 6 : index
    %c0_37 = arith.constant 0 : index
    %c0_38 = arith.constant 0 : index
    %70 = vector.load %arg2[%c6, %c0_37, %c0_38] : memref<9x1x256xf32, #tpu.memory_space<vmem>>, vector<1x1x256xf32>
    %71 = vector.shape_cast %70 : vector<1x1x256xf32> to vector<1x256xf32>
    %72 = vector.broadcast %71 : vector<1x256xf32> to vector<16x256xf32>
    %73 = arith.mulf %69, %72 : vector<16x256xf32>
    %c6_39 = arith.constant 6 : index
    %c0_40 = arith.constant 0 : index
    %c0_41 = arith.constant 0 : index
    %74 = vector.load %arg5[%c6_39, %c0_40, %c0_41] : memref<9x16x1xf32, #tpu.memory_space<vmem>>, vector<1x16x1xf32>
    %75 = vector.shape_cast %74 : vector<1x16x1xf32> to vector<16x1xf32>
    %76 = vector.broadcast %75 : vector<16x1xf32> to vector<16x256xf32>
    %77 = arith.mulf %73, %76 : vector<16x256xf32>
    %78 = arith.addf %68, %77 : vector<16x256xf32>
    %c240_i32 = arith.constant 240 : i32
    %79 = tpu.dynamic_rotate %14 by %c240_i32 dim 1 : vector<16x256xf32>, i32 -> vector<16x256xf32>
    %c7 = arith.constant 7 : index
    %c0_42 = arith.constant 0 : index
    %c0_43 = arith.constant 0 : index
    %80 = vector.load %arg2[%c7, %c0_42, %c0_43] : memref<9x1x256xf32, #tpu.memory_space<vmem>>, vector<1x1x256xf32>
    %81 = vector.shape_cast %80 : vector<1x1x256xf32> to vector<1x256xf32>
    %82 = vector.broadcast %81 : vector<1x256xf32> to vector<16x256xf32>
    %83 = arith.mulf %79, %82 : vector<16x256xf32>
    %c7_44 = arith.constant 7 : index
    %c0_45 = arith.constant 0 : index
    %c0_46 = arith.constant 0 : index
    %84 = vector.load %arg5[%c7_44, %c0_45, %c0_46] : memref<9x16x1xf32, #tpu.memory_space<vmem>>, vector<1x16x1xf32>
    %85 = vector.shape_cast %84 : vector<1x16x1xf32> to vector<16x1xf32>
    %86 = vector.broadcast %85 : vector<16x1xf32> to vector<16x256xf32>
    %87 = arith.mulf %83, %86 : vector<16x256xf32>
    %88 = arith.addf %78, %87 : vector<16x256xf32>
    %c239_i32 = arith.constant 239 : i32
    %89 = tpu.dynamic_rotate %14 by %c239_i32 dim 1 : vector<16x256xf32>, i32 -> vector<16x256xf32>
    %c8 = arith.constant 8 : index
    %c0_47 = arith.constant 0 : index
    %c0_48 = arith.constant 0 : index
    %90 = vector.load %arg2[%c8, %c0_47, %c0_48] : memref<9x1x256xf32, #tpu.memory_space<vmem>>, vector<1x1x256xf32>
    %91 = vector.shape_cast %90 : vector<1x1x256xf32> to vector<1x256xf32>
    %92 = vector.broadcast %91 : vector<1x256xf32> to vector<16x256xf32>
    %93 = arith.mulf %89, %92 : vector<16x256xf32>
    %c8_49 = arith.constant 8 : index
    %c0_50 = arith.constant 0 : index
    %c0_51 = arith.constant 0 : index
    %94 = vector.load %arg5[%c8_49, %c0_50, %c0_51] : memref<9x16x1xf32, #tpu.memory_space<vmem>>, vector<1x16x1xf32>
    %95 = vector.shape_cast %94 : vector<1x16x1xf32> to vector<16x1xf32>
    %96 = vector.broadcast %95 : vector<16x1xf32> to vector<16x256xf32>
    %97 = arith.mulf %93, %96 : vector<16x256xf32>
    %98 = arith.addf %88, %97 : vector<16x256xf32>
    %c0_52 = arith.constant 0 : index
    %c0_53 = arith.constant 0 : index
    %99 = vector.load %arg6[%c0_52, %c0_53] : memref<16x1xf32, #tpu.memory_space<vmem>>, vector<16x1xf32>
    %100 = vector.broadcast %99 : vector<16x1xf32> to vector<16x256xf32>
    %101 = arith.addf %98, %100 : vector<16x256xf32>
    %cst_54 = arith.constant 3.000000e+00 : f32
    %102 = vector.broadcast %cst_54 : f32 to vector<16x256xf32>
    %103 = arith.addf %101, %102 : vector<16x256xf32>
    %cst_55 = arith.constant 0.000000e+00 : f32
    %cst_56 = arith.constant 6.000000e+00 : f32
    %104 = vector.broadcast %cst_55 : f32 to vector<16x256xf32>
    %105 = arith.maximumf %104, %103 : vector<16x256xf32>
    %106 = vector.broadcast %cst_56 : f32 to vector<16x256xf32>
    %107 = arith.minimumf %106, %105 : vector<16x256xf32>
    %108 = arith.mulf %101, %107 : vector<16x256xf32>
    %cst_57 = arith.constant 0.166666672 : f32
    %109 = vector.broadcast %cst_57 : f32 to vector<16x256xf32>
    %110 = arith.mulf %108, %109 : vector<16x256xf32>
    %cst_58 = arith.constant dense<0.000000e+00> : vector<16xf32>
    %111 = vector.multi_reduction <add>, %110, %cst_58 [1] : vector<16x256xf32> to vector<16xf32>
    %112 = vector.shape_cast %111 : vector<16xf32> to vector<16x1xf32>
    %cst_59 = arith.constant 2.560000e+02 : f32
    %113 = vector.broadcast %cst_59 : f32 to vector<16x1xf32>
    %114 = arith.divf %112, %113 : vector<16x1xf32>
    %c0_60 = arith.constant 0 : index
    %c0_61 = arith.constant 0 : index
    %115 = vector.load %arg7[%c0_60, %c0_61] : memref<4x16xf32, #tpu.memory_space<vmem>>, vector<4x16xf32>
    %cst_62 = arith.constant dense<0.000000e+00> : vector<4x1xf32>
    %116 = tpu.matmul %115, %114, %cst_62 {dimension_numbers = #tpu.dot_dimension_numbers<[1], [0], [0], [1], [0, 0, 1, 1], [], []>} : vector<4x16xf32>, vector<16x1xf32>, vector<4x1xf32> -> vector<4x1xf32>
    %c0_63 = arith.constant 0 : index
    %c0_64 = arith.constant 0 : index
    %117 = vector.load %arg8[%c0_63, %c0_64] : memref<4x1xf32, #tpu.memory_space<vmem>>, vector<4x1xf32>
    %118 = arith.addf %116, %117 : vector<4x1xf32>
    %cst_65 = arith.constant 0.000000e+00 : f32
    %119 = vector.broadcast %cst_65 : f32 to vector<4x1xf32>
    %120 = arith.maximumf %118, %119 : vector<4x1xf32>
    %c0_66 = arith.constant 0 : index
    %c0_67 = arith.constant 0 : index
    %121 = vector.load %arg9[%c0_66, %c0_67] : memref<16x4xf32, #tpu.memory_space<vmem>>, vector<16x4xf32>
    %cst_68 = arith.constant dense<0.000000e+00> : vector<16x1xf32>
    %122 = tpu.matmul %121, %120, %cst_68 {dimension_numbers = #tpu.dot_dimension_numbers<[1], [0], [0], [1], [0, 0, 1, 1], [], []>} : vector<16x4xf32>, vector<4x1xf32>, vector<16x1xf32> -> vector<16x1xf32>
    %c0_69 = arith.constant 0 : index
    %c0_70 = arith.constant 0 : index
    %123 = vector.load %arg10[%c0_69, %c0_70] : memref<16x1xf32, #tpu.memory_space<vmem>>, vector<16x1xf32>
    %124 = arith.addf %122, %123 : vector<16x1xf32>
    %cst_71 = arith.constant 3.000000e+00 : f32
    %125 = vector.broadcast %cst_71 : f32 to vector<16x1xf32>
    %126 = arith.addf %124, %125 : vector<16x1xf32>
    %cst_72 = arith.constant 0.000000e+00 : f32
    %cst_73 = arith.constant 6.000000e+00 : f32
    %127 = vector.broadcast %cst_72 : f32 to vector<16x1xf32>
    %128 = arith.maximumf %127, %126 : vector<16x1xf32>
    %129 = vector.broadcast %cst_73 : f32 to vector<16x1xf32>
    %130 = arith.minimumf %129, %128 : vector<16x1xf32>
    %cst_74 = arith.constant 0.166666672 : f32
    %131 = vector.broadcast %cst_74 : f32 to vector<16x1xf32>
    %132 = arith.mulf %130, %131 : vector<16x1xf32>
    %133 = vector.broadcast %132 : vector<16x1xf32> to vector<16x256xf32>
    %134 = arith.mulf %110, %133 : vector<16x256xf32>
    %c0_75 = arith.constant 0 : index
    %c0_76 = arith.constant 0 : index
    %135 = vector.load %arg11[%c0_75, %c0_76] : memref<8x16xf32, #tpu.memory_space<vmem>>, vector<8x16xf32>
    %cst_77 = arith.constant dense<0.000000e+00> : vector<8x256xf32>
    %136 = tpu.matmul %135, %134, %cst_77 {dimension_numbers = #tpu.dot_dimension_numbers<[1], [0], [0], [1], [0, 0, 1, 1], [], []>} : vector<8x16xf32>, vector<16x256xf32>, vector<8x256xf32> -> vector<8x256xf32>
    %c0_78 = arith.constant 0 : index
    %c0_79 = arith.constant 0 : index
    %137 = vector.load %arg12[%c0_78, %c0_79] : memref<8x1xf32, #tpu.memory_space<vmem>>, vector<8x1xf32>
    %138 = vector.broadcast %137 : vector<8x1xf32> to vector<8x256xf32>
    %139 = arith.addf %136, %138 : vector<8x256xf32>
    %140 = arith.addf %139, %0 : vector<8x256xf32>
    %c0_80 = arith.constant 0 : index
    %c0_81 = arith.constant 0 : index
    %141 = vector.load %arg13[%c0_80, %c0_81] : memref<8x256xf32, #tpu.memory_space<vmem>>, vector<8x256xf32>
    tpu.vector_store %arg13[%c0_80, %c0_81], %140 {strides = array<i32>} : memref<8x256xf32, #tpu.memory_space<vmem>>, vector<8x256xf32>,
    return
  }
  func.func @transform_0(%arg0: i32) -> (i32, i32) {
    %c0_i32 = arith.constant 0 : i32
    %c0_i32_0 = arith.constant 0 : i32
    return %c0_i32, %arg0 : i32, i32
  }
  func.func @transform_1(%arg0: i32) -> (i32, i32, i32) {
    %c0_i32 = arith.constant 0 : i32
    %c0_i32_0 = arith.constant 0 : i32
    %c0_i32_1 = arith.constant 0 : i32
    %c0_i32_2 = arith.constant 0 : i32
    return %c0_i32, %c0_i32_0, %c0_i32_1 : i32, i32, i32
  }
  func.func @transform_2(%arg0: i32) -> (i32, i32) {
    %c0_i32 = arith.constant 0 : i32
    %c0_i32_0 = arith.constant 0 : i32
    %c0_i32_1 = arith.constant 0 : i32
    return %c0_i32, %c0_i32_0 : i32, i32
  }
  func.func @transform_3(%arg0: i32) -> (i32, i32) {
    %c0_i32 = arith.constant 0 : i32
    %c0_i32_0 = arith.constant 0 : i32
    %c0_i32_1 = arith.constant 0 : i32
    return %c0_i32, %c0_i32_0 : i32, i32
  }
  func.func @transform_4(%arg0: i32) -> (i32, i32, i32) {
    %c0_i32 = arith.constant 0 : i32
    %c0_i32_0 = arith.constant 0 : i32
    %c0_i32_1 = arith.constant 0 : i32
    %c0_i32_2 = arith.constant 0 : i32
    return %c0_i32, %c0_i32_0, %c0_i32_1 : i32, i32, i32
  }
  func.func @transform_5(%arg0: i32) -> (i32, i32) {
    %c0_i32 = arith.constant 0 : i32
    %c0_i32_0 = arith.constant 0 : i32
    %c0_i32_1 = arith.constant 0 : i32
    return %c0_i32, %c0_i32_0 : i32, i32
  }
  func.func @transform_6(%arg0: i32) -> (i32, i32) {
    %c0_i32 = arith.constant 0 : i32
    %c0_i32_0 = arith.constant 0 : i32
    %c0_i32_1 = arith.constant 0 : i32
    return %c0_i32, %c0_i32_0 : i32, i32
  }
  func.func @transform_7(%arg0: i32) -> (i32, i32) {
    %c0_i32 = arith.constant 0 : i32
    %c0_i32_0 = arith.constant 0 : i32
    %c0_i32_1 = arith.constant 0 : i32
    return %c0_i32, %c0_i32_0 : i32, i32
  }
  func.func @transform_8(%arg0: i32) -> (i32, i32) {
    %c0_i32 = arith.constant 0 : i32
    %c0_i32_0 = arith.constant 0 : i32
    %c0_i32_1 = arith.constant 0 : i32
    return %c0_i32, %c0_i32_0 : i32, i32
  }
  func.func @transform_9(%arg0: i32) -> (i32, i32) {
    %c0_i32 = arith.constant 0 : i32
    %c0_i32_0 = arith.constant 0 : i32
    %c0_i32_1 = arith.constant 0 : i32
    return %c0_i32, %c0_i32_0 : i32, i32
  }
  func.func @transform_10(%arg0: i32) -> (i32, i32) {
    %c0_i32 = arith.constant 0 : i32
    %c0_i32_0 = arith.constant 0 : i32
    %c0_i32_1 = arith.constant 0 : i32
    return %c0_i32, %c0_i32_0 : i32, i32
  }
  func.func @transform_11(%arg0: i32) -> (i32, i32) {
    %c0_i32 = arith.constant 0 : i32
    %c0_i32_0 = arith.constant 0 : i32
    %c0_i32_1 = arith.constant 0 : i32
    return %c0_i32, %c0_i32_0 : i32, i32
  }
  func.func @transform_12(%arg0: i32) -> (i32, i32) {
    %c0_i32 = arith.constant 0 : i32
    %c0_i32_0 = arith.constant 0 : i32
    return %c0_i32, %arg0 : i32, i32
  }
}

</mosaic_0001>

<bundles_post_ra>
// kernel: tpu_custom_call.1
= control target key start
LH: loop header
LB: loop body
LE: loop exit
PB: predicated region body
PF: predicated region fallthrough
CT: control target
= control target key end

     0   :  { %17 = vsyncpa [#allocation3], 0  ;;  %s2151_s0 = inlined_call_operand.vmem [shape: f32[8,512], index: 0, kind: input, shape index: {}]   ;;  %s2152_s1 = inlined_call_operand.vmem [shape: f32[9,1,256], index: 1, kind: input, shape index: {}]   ;;  %s2153_s2 = inlined_call_operand.vmem [shape: f32[16,8], index: 2, kind: input, shape index: {}]   ;;  %s2154_s3 = inlined_call_operand.vmem [shape: f32[16,1], index: 3, kind: input, shape index: {}]   ;;  %s2155_s4 = inlined_call_operand.vmem [shape: f32[9,16,1], index: 4, kind: input, shape index: {}]   ;;  %s2156_s5 = inlined_call_operand.vmem [shape: f32[16,1], index: 5, kind: input, shape index: {}]   ;;  %s2157_s6 = inlined_call_operand.vmem [shape: f32[4,16], index: 6, kind: input, shape index: {}]   ;;  %s2158_s7 = inlined_call_operand.vmem [shape: f32[4,1], index: 7, kind: input, shape index: {}]   ;;  %s2159_s8 = inlined_call_operand.vmem [shape: f32[16,4], index: 8, kind: input, shape index: {}]   ;;  %s2160_s9 = inlined_call_operand.vmem [shape: f32[16,1], index: 9, kind: input, shape index: {}]   ;;  %s2161_s10 = inlined_call_operand.vmem [shape: f32[8,16], index: 10, kind: input, shape index: {}]   ;;  %s2162_s11 = inlined_call_operand.vmem [shape: f32[8,1], index: 11, kind: input, shape index: {}]   ;;  %s2163_s12 = inlined_call_operand.hbm [shape: f32[8,512], index: 12, kind: output, shape index: {}]  }
   0x1   :  { %19 = vsyncpa [#allocation3 + $0x1], 0  ;;  %s1616_s21 = smov 0   ;;  %s1618_s22 = smov 0  }
   0x2   :  { %s1620_s23 = smov 0   ;;  %s1622_s24 = smov 0  }
   0x3 LB: > { %2171 = sst [smem:[#allocation5_spill]] %s1532_s23  ;;  %s1637_s25 = sadd.s32 4294967295, %s1536_s24   ;;  %s1536_s24 = sphi %s1622_s24, %s2183_s24   ;;  %s1532_s23 = sphi %s1620_s23, %s2185_s23   ;;  %s1528_s22 = sphi %s1618_s22, %s2187_s22   ;;  %s1524_s21 = sphi %s1616_s21, %s2186_s21  }
   0x4   : > { %s1353_s26 = sadd.s32 4294967294, %s1536_s24   ;;  %s1641_s27 = sadd.s32 1, %s1536_s24  }
   0x5   : > { %2172 = sst [smem:[#allocation6_spill]] %s1641_s27  ;;  %s289_s28 = sadd.s32 1, %s1532_s23 }
   0x6   : > { %s286_s29 = ssub.s32 %s1536_s24, %s1641_s27  ;;  %p299_p0 = scmp.ne.s32.totalorder %s1532_s23, %s1528_s22 }
   0x7   : > { %p287_p1 = scmp.eq.s32.totalorder %s286_s29, 0  ;;  %p300_p2 = scmp.eq.s32.totalorder %s1637_s25, 1 }
   0x8   : > { %p305_p3 = scmp.ne.s32.totalorder %s1528_s22, %s1524_s21  ;;  %p306_p4 = scmp.eq.s32.totalorder %s1353_s26, 1 }
   0x9   : > { %s1652_s30 = scalar_select %p287_p1, %s1532_s23, %s289_s28  }
   0xa   : > { %p1654_p5 = por %p300_p2, %p299_p0  ;;  %p1658_p6 = por %p306_p4, %p305_p3 }
   0xb   : > { %2173 = sst [smem:[#allocation7_spill]] %s1652_s30  ;;  %p1356_p7 = scmp.ge.s32.totalorder %s1536_s24, 1 }
   0xc   : > { %s2175_s14 = scalar_select %p1658_p6, 1, 0 }
   0xd   : > { %p366_p8 = scmp.lt.s32.totalorder %s1536_s24, 3 }
   0xe   : > { %2176 = sst [smem:[#allocation8_spill]] %s2175_s14 }
   0xf   : > { %p367_p9 = pnand %p1356_p7, %p366_p8 }
  0x11   : > { %370 = sbr.rel (%p367_p9) target bundleno = 1424 (0x590), region = 68 }
  0x18   : > { %s1358_s15 = sshll.u32 %s1637_s25, 1  ;;  %v2168_v0 = vmov 0.0   ;;  %v1539_v1 = vmov 0   ;;  %v419_v2 = vld [vmem:[%s2154_s3] sm:$0xff]  ;;  %v420_v3 = vld [vmem:[%s2154_s3 + $0x8] sm:$0xff]  ;;  %vm431_vm0 = vcmask 64512  }
  0x19   : > { %p409_p10 = scmp.lt.s32.totalorder %s1358_s15, 3  ;;  %502 = vmatprep.mubr.f32.mxu0 %v2168_v0  ;;  %1472 = vset.pattern.permute.xlu0 %v1539_v1  ;;  %v1362_v4 = vld [vmem:[%s2155_s4 + $0x40] sm:$0xff]  ;;  %v1363_v6 = vld [vmem:[%s2155_s4 + $0x48] sm:$0xff]  ;;  %v1365_v12 = vld [vmem:[%s2155_s4 + $0x10] sm:$0xff]  ;;  %s1540_s26 = smov 17   ;;  %vm1549_vm9 = vmmov 0  }
  0x1a   : > { %423 = vperm.xlu0 %1472, %v419_v2   ;;  %1473 = vset.pattern.permute.xlu1 %v1539_v1  ;;  %v417_v5 = vld [vmem:[%s2153_s2] sm:$0xff]  ;;  %v584_v10 = vld [vmem:[%s2155_s4 + $0x8] sm:$0xff]  ;;  %v1366_v13 = vld [vmem:[%s2155_s4 + $0x18] sm:$0xff]  ;;  %s1542_s29 = smov 15   ;;  %s1543_s16 = smov 1   ;;  %vm1007_vm10 = vcmask 130048  }
  0x1b   : > { %s2189_s15 = smov (!%p409_p10, %s1358_s15), 3  ;;  %540 = vperm.xlu1 %1473, %v1362_v4   ;;  %v583_v9 = vld [vmem:[%s2155_s4] sm:$0xff]  ;;  %v418_v11 = vld [vmem:[%s2153_s2 + $0x8] sm:$0xff]  ;;  %v1371_v16 = vld [vmem:[%s2155_s4 + $0x30] sm:$0xff]  ;;  %s1544_s17 = smov 127   ;;  %vm1086_vm11 = vcmask 31744  }
  0x1c   : > { %s1359_s28 = sshll.u32 %s2189_s15, 3  ;;  %v1368_v14 = vld [vmem:[%s2155_s4 + $0x20] sm:$0xff]  ;;  %v1369_v15 = vld [vmem:[%s2155_s4 + $0x28] sm:$0xff]  ;;  %v1372_v17 = vld [vmem:[%s2155_s4 + $0x38] sm:$0xff]  ;;  %s1545_s15 = smov 113   ;;  %vm1093_vm12 = vcmask 1043456  }
  0x1d   : > { %s412_s23 = scalar_lea.vmem %s2151_s0, %s1359_s28  ;;  %v1374_v18 = vld [vmem:[%s2155_s4 + $0x50] sm:$0xff]  ;;  %v1375_v19 = vld [vmem:[%s2155_s4 + $0x58] sm:$0xff]  ;;  %v1377_v20 = vld [vmem:[%s2155_s4 + $0x60] sm:$0xff]  ;;  %s1541_s28 = smov 16  }
  0x1e   : > { %428 = vperm.xlu0 %1472, %v420_v3   ;;  %v1684_v7 = vld [vmem:[%s412_s23 + $0x8] sm:$0xff]  ;;  %v1686_v8 = vld [vmem:[%s412_s23] sm:$0xff]  ;;  %v1380_v22 = vld [vmem:[%s2155_s4 + $0x70] sm:$0xff]  ;;  %s1546_s18 = smov 112   ;;  %s1547_s27 = smov 111  }
  0x1f   : > { %2177 = vst [vmem:[#allocation9_spill] sm:$0xff] %v1684_v7  ;;  %2178 = vst [vmem:[#allocation10_spill] sm:$0xff] %v1686_v8  ;;  %438 = vmatprep.subr.mxu0 %v1684_v7  ;;  %545 = vperm.xlu1 %1473, %v1363_v6   ;;  %v1378_v21 = vld [vmem:[%s2155_s4 + $0x68] sm:$0xff]  ;;  %v1381_v23 = vld [vmem:[%s2155_s4 + $0x78] sm:$0xff] }
  0x20   : > { %439 = vmatpush1.msra.mxu0 %v1686_v8  ;;  %v1383_v24 = vld [vmem:[%s2155_s4 + $0x80] sm:$0xff]  ;;  %v1384_v25 = vld [vmem:[%s2155_s4 + $0x88] sm:$0xff] }
  0x21   : > { %1360 = vmatmul.mubr.msk.f32.vlgmr.msra.gmra.mrb[0].mxu0 %vm431_vm0, %v417_v5  ;;  %v960_v56 = vld [vmem:[%s2156_s5] sm:$0xff]  ;;  %v961_v58 = vld [vmem:[%s2156_s5 + $0x8] sm:$0xff] }
  0x22   : > { %587 = vperm.xlu0 %1472, %v583_v9   ;;  %508 = vmatprep.mubr.f32.mxu0 %v2168_v0 }
  0x23   : > { %592 = vperm.xlu1 %1473, %v584_v10  }
  0x25   : > { %1361 = vmatmul.mubr.msk.f32.gmra.mrb[2].mxu0 %vm431_vm0, %v418_v11 }
  0x26   : > { %638 = vperm.xlu0 %1472, %v1365_v12   ;;  %1268 = vmatprep.mubr.f32.mxu0 %v2168_v0 }
  0x27   : > { %643 = vperm.xlu1 %1473, %v1366_v13  }
  0x2a   : > { %689 = vperm.xlu0 %1472, %v1368_v14  }
  0x2b   : > { %694 = vperm.xlu1 %1473, %v1369_v15  }
  0x2e   : > { %740 = vperm.xlu0 %1472, %v1371_v16  }
  0x2f   : > { %745 = vperm.xlu1 %1473, %v1372_v17  }
  0x32   : > { %791 = vperm.xlu0 %1472, %v1374_v18  }
  0x33   : > { %796 = vperm.xlu1 %1473, %v1375_v19  }
  0x36   : > { %842 = vperm.xlu0 %1472, %v1377_v20  }
  0x37   : > { %847 = vperm.xlu1 %1473, %v1378_v21  }
  0x3a   : > { %893 = vperm.xlu0 %1472, %v1380_v22  }
  0x3b   : > { %898 = vperm.xlu1 %1473, %v1381_v23  }
  0x3e   : > { %944 = vperm.xlu0 %1472, %v1383_v24   ;;  %v560_v24 = vlaneseq }
  0x3f   : > { %949 = vperm.xlu1 %1473, %v1384_v25  }
  0x99   : > { %v424_v26 = vpop.permute.xlu0 %423 }
  0x9a   : > { %v541_v57 = vpop.permute.xlu1 %540 }
  0x9d   : > { %v429_v31 = vpop.permute.xlu0 %428 }
  0x9e   : > { %v546_v60 = vpop.permute.xlu1 %545 }
  0xa1   : > { %v1805_v59 = vpop.permute.xlu0 %587 }
  0xa2   : > { %v1807_v61 = vpop.permute.xlu1 %592 }
  0xa5   : > { %v1809_v62 = vpop.permute.xlu0 %638 }
  0xa6   : > { %v1811_v63 = vpop.permute.xlu1 %643 }
  0xa9   : > { %v1813_v1 = vpop.permute.xlu0 %689 }
  0xaa   : > { %v1815_v2 = vpop.permute.xlu1 %694 }
  0xad   : > { %v1817_v3 = vpop.permute.xlu0 %740 }
  0xae   : > { %v1819_v4 = vpop.permute.xlu1 %745 }
  0xb1   : > { %v1821_v5 = vpop.permute.xlu0 %791 }
  0xb2   : > { %v1823_v6 = vpop.permute.xlu1 %796 }
  0xb5   : > { %v1825_v9 = vpop.permute.xlu0 %842 }
  0xb6   : > { %v1827_v10 = vpop.permute.xlu1 %847 }
  0xb9   : > { %v1829_v11 = vpop.permute.xlu0 %893 }
  0xba   : > { %v1831_v12 = vpop.permute.xlu1 %898 }
  0xbd   : > { %v1833_v13 = vpop.permute.xlu0 %944 }
  0xbe   : > { %v1835_v14 = vpop.permute.xlu1 %949 }
  0xf4   : > { %v504_v27 = vpop.f32.mrb[0].mxu0 }
  0xf5   : > { %v505_v28 = vadd.f32 %v504_v27, %v424_v26  ;;  %v506_v29 = vpop.f32.mrb[1].mxu0  ;;  %v570_v27 = vshrl.u32 %v560_v24, 7 }
  0xf6   : > { %v507_v44 = vadd.f32 %v506_v29, %v424_v26 }
  0xf7   : > { %v515_v30 = vadd.f32 3.0, %v505_v28 }
  0xf8   : > { %v510_v32 = vpop.f32.mrb[2].mxu0  ;;  %v516_v45 = vadd.f32 3.0, %v507_v44 }
  0xf9   : > { %v519_v33 = vmax.f32 %v515_v30, 0.0  ;;  %v511_v34 = vadd.f32 %v510_v32, %v429_v31  ;;  %v512_v35 = vpop.f32.mrb[3].mxu0  ;;  %v1857_v30 = vand.u32 127, %v560_v24  ;;  %v1861_v32 = vsub.s32 1, %v570_v27 }
  0xfa   : > { %v513_v46 = vadd.f32 %v512_v35, %v429_v31  ;;  %v520_v47 = vmax.f32 %v516_v45, 0.0  ;;  %v1859_v31 = vsub.s32 0, %v570_v27  ;;  %v1376_v27 = vld [vmem:[%s2152_s1 + $0xc] sm:$0x3] }
  0xfb   : > { %v523_v36 = vmin.f32 %v519_v33, 6.0  ;;  %v517_v37 = vadd.f32 3.0, %v511_v34  ;;  %v567_v33 = vld [vmem:[%s2152_s1] sm:$0x3]  ;;  %vm562_vm1 = vcmp.lt.s32.totalorder %v1857_v30, 17  ;;  %vm611_vm2 = vcmp.lt.s32.totalorder %v1857_v30, 16 }
  0xfc   : > { %v518_v48 = vadd.f32 3.0, %v513_v46  ;;  %v524_v49 = vmin.f32 %v520_v47, 6.0  ;;  %vm662_vm3 = vcmp.lt.s32.totalorder %v1857_v30, 15  ;;  %vm713_vm4 = vcmp.lt.s32.totalorder %v1857_v30, 1 }
  0xfd   : > { %v527_v38 = vmul.f32 %v523_v36, %v505_v28  ;;  %v521_v39 = vmax.f32 %v517_v37, 0.0  ;;  %v572_v36 = vrot.slane %v567_v33, %v1859_v31  ;;  %v576_v37 = vrot.slane %v567_v33, %v1861_v32 }
  0xfe   : > { %v522_v50 = vmax.f32 %v518_v48, 0.0  ;;  %v528_v51 = vmul.f32 %v524_v49, %v507_v44  ;;  %vm764_vm5 = vcmp.lt.s32.totalorder %v1857_v30, 127  ;;  %vm815_vm6 = vcmp.lt.s32.totalorder %v1857_v30, 113 }
  0xff   : > { %v1743_v40 = vmul.f32 0.16666667, %v527_v38  ;;  %v525_v41 = vmin.f32 %v521_v39, 6.0  ;;  %v1364_v38 = vld [vmem:[%s2152_s1 + $0x2] sm:$0x3]  ;;  %vm866_vm7 = vcmp.lt.s32.totalorder %v1857_v30, 112 }
 0x100   : > { %v526_v52 = vmin.f32 %v522_v50, 6.0  ;;  %v1770_v53 = vmul.f32 0.16666667, %v528_v51  ;;  %v622_v51 = vrot.slane %v1364_v38, %v1859_v31  ;;  %vm917_vm8 = vcmp.lt.s32.totalorder %v1857_v30, 111 }
 0x101   : > { %v529_v42 = vmul.f32 %v525_v41, %v511_v34  ;;  %552 = vrot.lane.b32.xlu0 %v1743_v40, %s1540_s26  ;;  %v548_v39 = vmul.f32 %v541_v57, %v1743_v40 }
 0x102   : > { %v530_v54 = vmul.f32 %v526_v52, %v513_v46  ;;  %v549_v41 = vmul.f32 %v541_v57, %v1770_v53  ;;  %v1367_v46 = vld [vmem:[%s2152_s1 + $0x4] sm:$0x3]  ;;  %v626_v52 = vrot.slane %v1364_v38, %v1861_v32 }
 0x103   : > { %v1747_v43 = vmul.f32 0.16666667, %v529_v42 }
 0x104   : > { %v1775_v55 = vmul.f32 0.16666667, %v530_v54  ;;  %v677_v54 = vrot.slane %v1367_v46, %v1861_v32 }
 0x105   : > { %554 = vrot.lane.b32.xlu1 %v1747_v43, %s1540_s26  ;;  %603 = vrot.lane.b32.xlu0 %v1743_v40, %s1541_s28  ;;  %v550_v42 = vmul.f32 %v546_v60, %v1747_v43 }
 0x106   : > { %v551_v47 = vmul.f32 %v546_v60, %v1775_v55 }
 0x109   : > { %605 = vrot.lane.b32.xlu1 %v1747_v43, %s1541_s28  ;;  %654 = vrot.lane.b32.xlu0 %v1743_v40, %s1542_s29 }
 0x10d   : > { %656 = vrot.lane.b32.xlu1 %v1747_v43, %s1542_s29  ;;  %705 = vrot.lane.b32.xlu0 %v1743_v40, %s1543_s16 }
 0x111   : > { %707 = vrot.lane.b32.xlu1 %v1747_v43, %s1543_s16  ;;  %756 = vrot.lane.b32.xlu0 %v1743_v40, %s1544_s17 }
 0x115   : > { %758 = vrot.lane.b32.xlu1 %v1747_v43, %s1544_s17  ;;  %807 = vrot.lane.b32.xlu0 %v1743_v40, %s1545_s15 }
 0x119   : > { %809 = vrot.lane.b32.xlu1 %v1747_v43, %s1545_s15  ;;  %858 = vrot.lane.b32.xlu0 %v1743_v40, %s1546_s18 }
 0x11d   : > { %860 = vrot.lane.b32.xlu1 %v1747_v43, %s1546_s18  ;;  %909 = vrot.lane.b32.xlu0 %v1743_v40, %s1547_s27  ;;  %v1370_v40 = vld [vmem:[%s2152_s1 + $0x6] sm:$0x3] }
 0x11e   : > { %v1908_v24 = vrot.slane %v1370_v40, %v1861_v32 }
 0x121   : > { %911 = vrot.lane.b32.xlu1 %v1747_v43, %s1547_s27  ;;  %556 = vrot.lane.b32.xlu0 %v1770_v53, %s1540_s26 }
 0x125   : > { %558 = vrot.lane.b32.xlu1 %v1775_v55, %s1540_s26  ;;  %607 = vrot.lane.b32.xlu0 %v1770_v53, %s1541_s28 }
 0x129   : > { %609 = vrot.lane.b32.xlu1 %v1775_v55, %s1541_s28  ;;  %658 = vrot.lane.b32.xlu0 %v1770_v53, %s1542_s29  ;;  %s1550_s28 = smov [#allocation2]  }
 0x12d   : > { %660 = vrot.lane.b32.xlu1 %v1775_v55, %s1542_s29  ;;  %709 = vrot.lane.b32.xlu0 %v1770_v53, %s1543_s16  ;;  %s1478_s29 = sshll.u32 %s1550_s28, 4  ;;  %s1479_s29 = int_to_ptr.vmem [resolvable:$false] %s1478_s29 }
 0x131   : > { %711 = vrot.lane.b32.xlu1 %v1775_v55, %s1543_s16  ;;  %760 = vrot.lane.b32.xlu0 %v1770_v53, %s1544_s17  ;;  %s1480_s16 = scalar_lea.vmem %s1479_s29, 512 }
 0x135   : > { %762 = vrot.lane.b32.xlu1 %v1775_v55, %s1544_s17  ;;  %811 = vrot.lane.b32.xlu0 %v1770_v53, %s1545_s15 }
 0x139   : > { %813 = vrot.lane.b32.xlu1 %v1775_v55, %s1545_s15  ;;  %862 = vrot.lane.b32.xlu0 %v1770_v53, %s1546_s18  ;;  %s405_s15 = sand.u32 1, %s1528_s22  }
 0x13d   : > { %864 = vrot.lane.b32.xlu1 %v1775_v55, %s1546_s18  ;;  %913 = vrot.lane.b32.xlu0 %v1770_v53, %s1547_s27  ;;  %v673_v53 = vrot.slane %v1367_v46, %v1859_v31  ;;  %v1379_v46 = vld [vmem:[%s2152_s1 + $0xe] sm:$0x3]  ;;  %s1357_s18 = sshll.u32 %s405_s15, 4 }
 0x13e   : > { %s407_s30 = scalar_lea.vmem [#allocation2], %s1357_s18 }
 0x13f   : > { %s1294_s23 = sshll.u32 %s407_s30, 4  ;;  %s2111_s23 = int_to_ptr.vmem [resolvable:$true] %s1294_s23 }
 0x140   : > { %s1474_s26 = scalar_lea.vmem %s2111_s23, 256  ;;  %p1481_p0 = scmp.lt.s32.totalorder %s2111_s23, %s1479_s29 }
 0x141   : > { %915 = vrot.lane.b32.xlu1 %v1775_v55, %s1547_s27  ;;  %964 = vperm.xlu0 %1472, %v960_v56   ;;  %v1373_v55 = vld [vmem:[%s2152_s1 + $0xa] sm:$0x3]  ;;  %s1395_s27 = sshll.u32 %s1637_s25, 8  ;;  %s1280_s25 = scalar_lea.sflag [#allocation3], %s405_s15 }
 0x142   : > { %s2109_s20 = scalar_lea.hbm %s2163_s12, %s1395_s27  ;;  %p1475_p11 = scmp.ne.s32.totalorder %s2111_s23, %s1474_s26 }
 0x143   : > { %p1482_p1 = scmp.lt.s32.totalorder %s1480_s16, %s1474_s26 }
 0x144   : > { %p1476_p12 = pnand %p1475_p11, %p1654_p5 }
 0x145   : > { %969 = vperm.xlu1 %1473, %v961_v58   ;;  %p1483_p2 = por %p1482_p1, %p1481_p0 }
 0x146   : > { %p1477_p13 = pneg %p1476_p12 }
 0x148   : > { %p1484_p3 = pnand %p1483_p2, %p1477_p13 }
 0x173   : > { %v553_v15 = vpop.permute.xlu0 %552 }
 0x177   : > { %v555_v16 = vpop.permute.xlu1 %554  ;;  %v604_v17 = vpop.permute.xlu0 %603 }
 0x17b   : > { %v1837_v18 = vpop.permute.xlu1 %605  ;;  %v1839_v19 = vpop.permute.xlu0 %654 }
 0x17f   : > { %v1841_v20 = vpop.permute.xlu1 %656  ;;  %v1843_v21 = vpop.permute.xlu0 %705 }
 0x183   : > { %v1845_v22 = vpop.permute.xlu1 %707  ;;  %v1847_v23 = vpop.permute.xlu0 %756 }
 0x187   : > { %v1849_v25 = vpop.permute.xlu1 %758  ;;  %v1851_v26 = vpop.permute.xlu0 %807 }
 0x18b   : > { %v1853_v28 = vpop.permute.xlu1 %809  ;;  %v1855_v29 = vpop.permute.xlu0 %858 }
 0x18f   : > { %v1866_v34 = vpop.permute.xlu1 %860  ;;  %v1868_v35 = vpop.permute.xlu0 %909 }
 0x193   : > { %v1879_v44 = vpop.permute.xlu1 %911  ;;  %v557_v45 = vpop.permute.xlu0 %556 }
 0x194   : > { %v563_v48 = vsel %vm562_vm1, %v553_v15, %v557_v45  ;;  %v565_v49 = vsel %vm562_vm1, %v557_v45, %v553_v15  ;;  %v1905_v15 = vrot.slane %v1370_v40, %v1859_v31  ;;  %v1925_v40 = vrot.slane %v1373_v55, %v1859_v31 }
 0x195   : > { %v579_v43 = vmul.f32 %v572_v36, %v565_v49  ;;  %v580_v50 = vmul.f32 %v576_v37, %v563_v48 }
 0x197   : > { %v595_v56 = vmul.f32 %v1805_v59, %v579_v43  ;;  %v596_v57 = vmul.f32 %v1805_v59, %v580_v50  ;;  %v559_v58 = vpop.permute.xlu1 %558  ;;  %v608_v60 = vpop.permute.xlu0 %607  ;;  %v1928_v43 = vrot.slane %v1373_v55, %v1861_v32  ;;  %v1943_v55 = vrot.slane %v1379_v46, %v1861_v32 }
 0x198   : > { %v564_v33 = vsel %vm562_vm1, %v555_v16, %v559_v58  ;;  %v566_v38 = vsel %vm562_vm1, %v559_v58, %v555_v16  ;;  %v612_v59 = vsel %vm611_vm2, %v604_v17, %v608_v60  ;;  %v614_v45 = vsel %vm611_vm2, %v608_v60, %v604_v17 }
 0x199   : > { %v581_v48 = vmul.f32 %v572_v36, %v566_v38  ;;  %v582_v49 = vmul.f32 %v576_v37, %v564_v33  ;;  %v629_v50 = vmul.f32 %v622_v51, %v614_v45  ;;  %v630_v16 = vmul.f32 %v626_v52, %v612_v59 }
 0x19a   : > { %v1932_v58 = vrot.slane %v1376_v27, %v1859_v31  ;;  %v1935_v17 = vrot.slane %v1376_v27, %v1861_v32  ;;  %v1940_v38 = vrot.slane %v1379_v46, %v1859_v31  ;;  %v599_v59 = vadd.f32 %v595_v56, %v548_v39 }
 0x19b   : > { %v597_v60 = vmul.f32 %v1807_v61, %v581_v48  ;;  %v598_v36 = vmul.f32 %v1807_v61, %v582_v49  ;;  %v610_v37 = vpop.permute.xlu1 %609  ;;  %v659_v33 = vpop.permute.xlu0 %658  ;;  %v600_v45 = vadd.f32 %v596_v57, %v549_v41  ;;  %v646_v61 = vmul.f32 %v1809_v62, %v629_v50 }
 0x19c   : > { %v613_v0 = vsel %vm611_vm2, %v1837_v18, %v610_v37  ;;  %v615_v27 = vsel %vm611_vm2, %v610_v37, %v1837_v18  ;;  %v647_v48 = vmul.f32 %v1809_v62, %v630_v16  ;;  %v663_v39 = vsel %vm662_vm3, %v1839_v19, %v659_v33 }
 0x19d   : > { %v631_v49 = vmul.f32 %v622_v51, %v615_v27  ;;  %v632_v7 = vmul.f32 %v626_v52, %v613_v0  ;;  %v601_v46 = vadd.f32 %v597_v60, %v550_v42  ;;  %v602_v8 = vadd.f32 %v598_v36, %v551_v47 }
 0x19e   : > { %v665_v41 = vsel %vm662_vm3, %v659_v33, %v1839_v19  ;;  %v681_v62 = vmul.f32 %v677_v54, %v663_v39  ;;  %v651_v52 = vadd.f32 %v647_v48, %v600_v45 }
 0x19f   : > { %v648_v18 = vmul.f32 %v1811_v63, %v631_v49  ;;  %v649_v56 = vmul.f32 %v1811_v63, %v632_v7  ;;  %v680_v57 = vmul.f32 %v673_v53, %v665_v41  ;;  %v661_v51 = vpop.permute.xlu1 %660  ;;  %v710_v0 = vpop.permute.xlu0 %709  ;;  %v650_v63 = vadd.f32 %v646_v61, %v599_v59 }
 0x1a0   : > { %v664_v42 = vsel %vm662_vm3, %v1841_v20, %v661_v51  ;;  %v666_v47 = vsel %vm662_vm3, %v661_v51, %v1841_v20  ;;  %v714_v19 = vsel %vm713_vm4, %v1843_v21, %v710_v0  ;;  %v716_v7 = vsel %vm713_vm4, %v710_v0, %v1843_v21 }
 0x1a1   : > { %v697_v50 = vmul.f32 %v1813_v1, %v680_v57  ;;  %v698_v16 = vmul.f32 %v1813_v1, %v681_v62  ;;  %v682_v60 = vmul.f32 %v673_v53, %v666_v47  ;;  %v683_v36 = vmul.f32 %v677_v54, %v664_v42  ;;  %v1382_v47 = vld [vmem:[%s2152_s1 + $0x10] sm:$0x3] }
 0x1a2   : > { %v731_v37 = vmul.f32 %v1905_v15, %v716_v7  ;;  %v732_v20 = vmul.f32 %v1908_v24, %v714_v19  ;;  %v652_v33 = vadd.f32 %v648_v18, %v601_v46  ;;  %v653_v27 = vadd.f32 %v649_v56, %v602_v8 }
 0x1a3   : > { %v701_v49 = vadd.f32 %v697_v50, %v650_v63  ;;  %v702_v39 = vadd.f32 %v698_v16, %v651_v52  ;;  %v712_v41 = vpop.permute.xlu1 %711  ;;  %v761_v21 = vpop.permute.xlu0 %760  ;;  %v699_v59 = vmul.f32 %v1815_v2, %v682_v60  ;;  %v700_v45 = vmul.f32 %v1815_v2, %v683_v36 }
 0x1a4   : > { %v748_v1 = vmul.f32 %v1817_v3, %v731_v37  ;;  %v749_v53 = vmul.f32 %v1817_v3, %v732_v20  ;;  %v715_v54 = vsel %vm713_vm4, %v1845_v22, %v712_v41  ;;  %v717_v8 = vsel %vm713_vm4, %v712_v41, %v1845_v22 }
 0x1a5   : > { %v765_v61 = vsel %vm764_vm5, %v1847_v23, %v761_v21  ;;  %v767_v2 = vsel %vm764_vm5, %v761_v21, %v1847_v23  ;;  %v703_v48 = vadd.f32 %v699_v59, %v652_v33  ;;  %v704_v3 = vadd.f32 %v700_v45, %v653_v27 }
 0x1a6   : > { %v752_v46 = vadd.f32 %v748_v1, %v701_v49  ;;  %v753_v18 = vadd.f32 %v749_v53, %v702_v39  ;;  %v733_v56 = vmul.f32 %v1905_v15, %v717_v8  ;;  %v734_v57 = vmul.f32 %v1908_v24, %v715_v54 }
 0x1a7   : > { %v782_v22 = vmul.f32 %v1925_v40, %v765_v61  ;;  %v783_v62 = vmul.f32 %v1928_v43, %v767_v2  ;;  %v763_v51 = vpop.permute.xlu1 %762  ;;  %v812_v0 = vpop.permute.xlu0 %811  ;;  %v928_v33 = vrot.slane %v1382_v47, %v1859_v31 }
 0x1a8   : > { %v766_v23 = vsel %vm764_vm5, %v1849_v25, %v763_v51  ;;  %v768_v42 = vsel %vm764_vm5, %v763_v51, %v1849_v25  ;;  %v816_v15 = vsel %vm815_vm6, %v1851_v26, %v812_v0  ;;  %v818_v24 = vsel %vm815_vm6, %v812_v0, %v1851_v26 }
 0x1a9   : > { %v750_v19 = vmul.f32 %v1819_v4, %v733_v56  ;;  %v751_v7 = vmul.f32 %v1819_v4, %v734_v57  ;;  %v799_v63 = vmul.f32 %v1821_v5, %v782_v22  ;;  %v800_v25 = vmul.f32 %v1821_v5, %v783_v62 }
 0x1aa   : > { %v784_v52 = vmul.f32 %v1925_v40, %v766_v23  ;;  %v785_v50 = vmul.f32 %v1928_v43, %v768_v42  ;;  %v833_v16 = vmul.f32 %v1932_v58, %v816_v15  ;;  %v834_v26 = vmul.f32 %v1935_v17, %v818_v24 }
 0x1ab   : > { %v754_v60 = vadd.f32 %v750_v19, %v703_v48  ;;  %v755_v36 = vadd.f32 %v751_v7, %v704_v3  ;;  %v814_v37 = vpop.permute.xlu1 %813  ;;  %v863_v20 = vpop.permute.xlu0 %862  ;;  %v932_v4 = vrot.slane %v1382_v47, %v1861_v32  ;;  %v803_v27 = vadd.f32 %v799_v63, %v752_v46 }
 0x1ac   : > { %v804_v49 = vadd.f32 %v800_v25, %v753_v18  ;;  %v850_v5 = vmul.f32 %v1825_v9, %v833_v16  ;;  %v851_v40 = vmul.f32 %v1825_v9, %v834_v26  ;;  %v817_v43 = vsel %vm815_vm6, %v1853_v28, %v814_v37 }
 0x1ad   : > { %v819_v39 = vsel %vm815_vm6, %v814_v37, %v1853_v28  ;;  %v867_v31 = vsel %vm866_vm7, %v1855_v29, %v863_v20  ;;  %v869_v32 = vsel %vm866_vm7, %v863_v20, %v1855_v29  ;;  %v801_v41 = vmul.f32 %v1823_v6, %v784_v52 }
 0x1ae   : > { %v802_v9 = vmul.f32 %v1823_v6, %v785_v50  ;;  %v854_v21 = vadd.f32 %v850_v5, %v803_v27  ;;  %v855_v59 = vadd.f32 %v851_v40, %v804_v49  ;;  %v835_v45 = vmul.f32 %v1932_v58, %v817_v43 }
 0x1af   : > { %v836_v1 = vmul.f32 %v1935_v17, %v819_v39  ;;  %v884_v28 = vmul.f32 %v1940_v38, %v867_v31  ;;  %v885_v53 = vmul.f32 %v1943_v55, %v869_v32  ;;  %v865_v54 = vpop.permute.xlu1 %864  ;;  %v914_v8 = vpop.permute.xlu0 %913  ;;  %v805_v57 = vadd.f32 %v801_v41, %v754_v60 }
 0x1b0   : > { %v868_v29 = vsel %vm866_vm7, %v1866_v34, %v865_v54  ;;  %v870_v6 = vsel %vm866_vm7, %v865_v54, %v1866_v34  ;;  %v918_v58 = vsel %vm917_vm8, %v1868_v35, %v914_v8  ;;  %v920_v17 = vsel %vm917_vm8, %v914_v8, %v1868_v35 }
 0x1b1   : > { %v852_v61 = vmul.f32 %v1827_v10, %v835_v45  ;;  %v853_v2 = vmul.f32 %v1827_v10, %v836_v1  ;;  %v901_v48 = vmul.f32 %v1829_v11, %v884_v28  ;;  %v902_v3 = vmul.f32 %v1829_v11, %v885_v53 }
 0x1b2   : > { %v886_v46 = vmul.f32 %v1940_v38, %v868_v29  ;;  %v887_v34 = vmul.f32 %v1943_v55, %v870_v6  ;;  %v935_v18 = vmul.f32 %v928_v33, %v918_v58  ;;  %v936_v56 = vmul.f32 %v932_v4, %v920_v17 }
 0x1b3   : > { %v806_v22 = vadd.f32 %v802_v9, %v755_v36  ;;  %v916_v62 = vpop.permute.xlu1 %915  ;;  %v906_v51 = vadd.f32 %v902_v3, %v855_v59  ;;  %v905_v0 = vadd.f32 %v901_v48, %v854_v21  ;;  %v856_v11 = vadd.f32 %v852_v61, %v805_v57  ;;  %v1005_v48 = vld [vmem:[%s2157_s6] sm:$0xf] }
 0x1b4   : > { %v903_v35 = vmul.f32 %v1831_v12, %v886_v46  ;;  %v904_v23 = vmul.f32 %v1831_v12, %v887_v34  ;;  %v952_v10 = vmul.f32 %v1833_v13, %v935_v18  ;;  %v953_v42 = vmul.f32 %v1833_v13, %v936_v56  ;;  %v1082_v3 = vld [vmem:[%s2159_s8] sm:$0xff] }
 0x1b5   : > { %v857_v15 = vadd.f32 %v853_v2, %v806_v22  ;;  %v919_v38 = vsel %vm917_vm8, %v1879_v44, %v916_v62  ;;  %v921_v55 = vsel %vm917_vm8, %v916_v62, %v1879_v44  ;;  %v1548_v8 = vmov 0.0|0.0   ;;  %v1006_v46 = vld [vmem:[%s2158_s7] sm:$0xf]  ;;  %v1083_v22 = vld [vmem:[%s2159_s8 + $0x8] sm:$0xff] }
 0x1b6   : > { %v937_v24 = vmul.f32 %v928_v33, %v919_v38  ;;  %v938_v47 = vmul.f32 %v932_v4, %v921_v55  ;;  %v957_v19 = vadd.f32 %v953_v42, %v906_v51  ;;  %v956_v7 = vadd.f32 %v952_v10, %v905_v0  ;;  %1414 = vmatprep.subr.bf16.mxu1 %v1548_v8  ;;  %v1085_v62 = vld [vmem:[%s2160_s9 + $0x8] sm:$0xff]  ;;  %v1084_v51 = vld [vmem:[%s2160_s9] sm:$0xff] }
 0x1b7   : > { %v908_v25 = vadd.f32 %v904_v23, %v857_v15  ;;  %v907_v13 = vadd.f32 %v903_v35, %v856_v11  ;;  %v2179_v29 = vmov 0.0  }
 0x1b8   : > { %v954_v12 = vmul.f32 %v1835_v14, %v937_v24  ;;  %v955_v63 = vmul.f32 %v1835_v14, %v938_v47  ;;  %1406 = vmatprep.mubr.msk.f32.mxu1 %vm1549_vm9, %v2179_v29 }
 0x1ba   : > { %v959_v52 = vadd.f32 %v955_v63, %v908_v25  ;;  %v958_v50 = vadd.f32 %v954_v12, %v907_v13 }
 0x1c0   : > { %v965_v16 = vpop.permute.xlu0 %964 }
 0x1c1   : > { %v972_v26 = vadd.f32 %v965_v16, %v956_v7  ;;  %v973_v60 = vadd.f32 %v965_v16, %v957_v19  ;;  %v1195_v7 = vld [vmem:[%s2162_s11] sm:$0xff] }
 0x1c3   : > { %v976_v36 = vadd.f32 3.0, %v972_v26  ;;  %v977_v37 = vadd.f32 3.0, %v973_v60 }
 0x1c4   : > { %v970_v20 = vpop.permute.xlu1 %969 }
 0x1c5   : > { %v980_v30 = vmax.f32 %v976_v36, 0.0  ;;  %v981_v44 = vmax.f32 %v977_v37, 0.0  ;;  %v974_v33 = vadd.f32 %v970_v20, %v958_v50  ;;  %v975_v4 = vadd.f32 %v970_v20, %v959_v52 }
 0x1c7   : > { %v984_v27 = vmin.f32 %v980_v30, 6.0  ;;  %v985_v49 = vmin.f32 %v981_v44, 6.0  ;;  %v978_v5 = vadd.f32 3.0, %v974_v33  ;;  %v979_v40 = vadd.f32 3.0, %v975_v4 }
 0x1c9   : > { %v988_v43 = vmul.f32 %v984_v27, %v972_v26  ;;  %v989_v14 = vmul.f32 %v985_v49, %v973_v60  ;;  %v982_v39 = vmax.f32 %v978_v5, 0.0  ;;  %v983_v31 = vmax.f32 %v979_v40, 0.0  ;;  %v1194_v60 = vld [vmem:[%s2161_s10] sm:$0xff] }
 0x1ca   : > { %v2181_v27 = vld [vmem:[#allocation9_spill] sm:$0xff] }
 0x1cb   : > { %v986_v32 = vmin.f32 %v982_v39, 6.0  ;;  %v987_v41 = vmin.f32 %v983_v31, 6.0  ;;  %v992_v9 = vmul.f32 0.16666667, %v988_v43  ;;  %v993_v21 = vmul.f32 0.16666667, %v989_v14 }
 0x1cd   : > { %v990_v59 = vmul.f32 %v986_v32, %v974_v33  ;;  %v991_v45 = vmul.f32 %v987_v41, %v975_v4  ;;  %v996_v1 = vadd.f32 %v993_v21, %v992_v9  ;;  %v2180_v33 = vld [vmem:[#allocation10_spill] sm:$0xff] }
 0x1cf   : > { %997 = vadd.xlane.f32.xlu0 %v996_v1  ;;  %v994_v28 = vmul.f32 0.16666667, %v990_v59  ;;  %v995_v53 = vmul.f32 0.16666667, %v991_v45 }
 0x1d1   : > { %v999_v54 = vadd.f32 %v995_v53, %v994_v28 }
 0x1d3   : > { %1000 = vadd.xlane.f32.xlu1 %v999_v54 }
 0x25c   : > { %v998_v6 = vpop.xlane.xlu0 %997 }
 0x25d   : > { %v1003_v17 = vmul.f32 0.00390625, %v998_v6 }
 0x260   : > { %v1001_v58 = vpop.xlane.xlu1 %1000 }
 0x261   : > { %v1004_v61 = vmul.f32 0.00390625, %v1001_v58 }
 0x263   : > { %v1415_v2 = vpack.c.bf16 %v1004_v61, %v1003_v17 }
 0x265   : > { %1416 = vmatpush3.bf16.msra.mxu1 %v1415_v2 }
 0x268   : > { %1407 = vmatmul.mubr.msk.f32.vlgmr.msra.gmra.mrb[0].mxu1 %vm1007_vm10, %v1005_v48 }
 0x269   : > { %1411 = vmatprep.mubr.msk.f32.mxu1 %vm1086_vm11, %v1082_v3 }
 0x33b   : > { %v1077_v34 = vpop.f32.mrb[0].mxu1 }
 0x33c   : > { %v1078_v18 = vadd.f32 %v1077_v34, %v1006_v46  ;;  %v1408_v56 = vpop.f32.mrb[1].mxu1 }
 0x33e   : > { %v1081_v57 = vmax.f32 %v1078_v18, 0.0 }
 0x340   : > { %1409 = vmatprep.subr.msk.mxu1 %vm1093_vm12, %v1081_v57 }
 0x341   : > { %1410 = vmatpush3.msk.msra.mxu1 %vm1093_vm12, %v1081_v57 }
 0x342   : > { %1412 = vmatmul.mubr.msk.f32.vlgmr.msra.gmra.mrb[2].mxu1 %vm1086_vm11, %v1083_v22 }
 0x415   : > { %v1413_v0 = vpop.f32.mrb[2].mxu1 }
 0x416   : > { %v1169_v35 = vadd.f32 %v1413_v0, %v1085_v62  ;;  %v1163_v23 = vpop.f32.mrb[3].mxu1 }
 0x417   : > { %v1164_v10 = vadd.f32 %v1163_v23, %v1084_v51 }
 0x418   : > { %v1173_v42 = vadd.f32 3.0, %v1169_v35 }
 0x419   : > { %v1172_v11 = vadd.f32 3.0, %v1164_v10 }
 0x41a   : > { %v1175_v15 = vmax.f32 %v1173_v42, 0.0 }
 0x41b   : > { %v1174_v38 = vmax.f32 %v1172_v11, 0.0 }
 0x41c   : > { %v1177_v55 = vmin.f32 %v1175_v15, 6.0 }
 0x41d   : > { %v1176_v24 = vmin.f32 %v1174_v38, 6.0 }
 0x41e   : > { %v1179_v47 = vmul.f32 0.16666667, %v1177_v55 }
 0x41f   : > { %v1178_v19 = vmul.f32 0.16666667, %v1176_v24 }
 0x420   : > { %1187 = vperm.xlu1 %1473, %v1179_v47  }
 0x421   : > { %1182 = vperm.xlu0 %1472, %v1178_v19  }
 0x425   : > { %1198 = vperm.xlu0 %1472, %v1195_v7  }
 0x49f   : > { %v1188_v12 = vpop.permute.xlu1 %1187 }
 0x4a0   : > { %v1192_v63 = vmul.f32 %v1188_v12, %v994_v28  ;;  %v1193_v25 = vmul.f32 %v1188_v12, %v995_v53  ;;  %v1183_v13 = vpop.permute.xlu0 %1182 }
 0x4a1   : > { %v1190_v52 = vmul.f32 %v1183_v13, %v992_v9  ;;  %v1191_v50 = vmul.f32 %v1183_v13, %v993_v21 }
 0x4a3   : > { %v1417_v16 = vpack.c.bf16 %v1193_v25, %v1191_v50  ;;  %v1419_v26 = vpack.c.bf16 %v1192_v63, %v1190_v52 }
 0x4a4   : > { %v1199_v36 = vpop.permute.xlu0 %1198 }
 0x4a5   : > { %1418 = vmatprep.subr.bf16.mxu0 %v1417_v16 }
 0x4a6   : > { %1420 = vmatpush1.bf16.msra.mxu0 %v1419_v26 }
 0x4a9   : > { %1389 = vmatmul.mubr.msk.f32.vlgmr.msra.gmra.mrb[4].mxu0 %vm1007_vm10, %v1194_v60 }
 0x57c   : > { %v1270_v37 = vpop.f32.mrb[4].mxu0 }
 0x57d   : > { %v1271_v20 = vadd.f32 %v1270_v37, %v1199_v36  ;;  %v1272_v30 = vpop.f32.mrb[5].mxu0 }
 0x57e   : > { %v1273_v44 = vadd.f32 %v1272_v30, %v1199_v36 }
 0x57f   : > { %v1275_v4 = vadd.f32 %v1271_v20, %v2180_v33 }
 0x580   : > { %v1276_v49 = vadd.f32 %v1273_v44, %v2181_v27 }
 0x581   : > { %1277 = vst [vmem:[%s407_s30] sm:$0xff] %v1275_v4 }
 0x582   : > { %1278 = vst [vmem:[%s407_s30 + $0x8] sm:$0xff] %v1276_v49 }
 0x583   : > { %1487 = shalt.err (!%p1484_p3)
}
 0x584   : > { %s1488_s17 = scalar_lea.hbm %s2109_s20, 256  ;;  %s1492_s27 = scalar_lea.hbm %s2163_s12, 512 }
 0x585   : > { %p1489_p4 = scmp.ne.s32.totalorder %s2109_s20, %s1488_s17  ;;  %p1493_p9 = scmp.lt.u32.totalorder %s2109_s20, %s2163_s12 }
 0x586   : > { %p1494_p10 = scmp.lt.u32.totalorder %s1492_s27, %s1488_s17  ;;  %p1496_p12 = scmp.lt.u32.totalorder %s1488_s17, %s2109_s20 }
 0x587   : > { %p1490_p7 = pnand %p1489_p4, %p1654_p5 }
 0x588   : > { %p1495_p11 = por %p1494_p10, %p1493_p9 }
 0x589   : > { %p1491_p8 = pneg %p1490_p7 }
 0x58a   : > { %p1497_p13 = por %p1496_p12, %p1495_p11 }
 0x58c   : > { %p1498_p0 = pnand %p1497_p13, %p1491_p8 }
 0x58e   : > { %1501 = shalt.err (!%p1498_p0)
}
 0x58f   : > { %1421 = dma.vmem_to_hbm [thread:$0]  (%p1654_p5), %s2111_s23, 256, %s2109_s20, %s1280_s25  }
 0x590 PF: > { %p1427_p1 = scmp.ge.s32.totalorder %s1536_s24, 2  ;;  %s1306_s26 = sand.u32 1, %s1524_s21  }
 0x591   : > { %s1307_s28 = scalar_lea.sflag [#allocation3], %s1306_s26 }
 0x592   : > { %p1424_p2 = pnand %p1427_p1, %p1658_p6 }
 0x594   : > { %1519 = dma.done.wait (!%p1424_p2), %s1307_s28, 256  }
 0x595   : > { %1521 = vsyncadd (!%p1424_p2), %s1307_s28, 4294967040  ;;  %s2183_s24 = sld [smem:[#allocation6_spill]]  ;;  %s2184_s29 = sld [smem:[#allocation5_spill]] }
 0x596   : > { %s2185_s23 = sld [smem:[#allocation7_spill]]  ;;  %s2186_s21 = smov %s1528_s22 }
 0x59b   : > { %p22_p3 = scmp.ge.s32.totalorder %s2183_s24, 4   ;;  %s2187_s22 = smov %s2184_s29 }
 0x59d   :  { %24 = sbr.rel (!%p22_p3) target bundleno = 3 (0x3), region = 118 }
 0x5a4   :  { %1312 = vsyncpa [#allocation3], 1 }
 0x5a5   :  { %1314 = vsyncpa [#allocation3 + $0x1], 1 }

</bundles_post_ra>
